<compile_context>
chip_gen: v6e
topology: v6e:2x2x1
jax: 0.10.0
libtpu: 0.0.40
codegen_flags: <defaults>
</compile_context>

<pallas_src>
import jax
import jax.numpy as jnp
from jax.experimental import pallas as pl
from jax.experimental.pallas import tpu as pltpu


def _round_up(x, m):
    return (x + m - 1) // m * m


# --------------------------------------------------------------------------
# Kernel: grid = (row tiles, K tiles), K innermost (reduction axis last).
# fc6 partials accumulate into a resident f32 VMEM scratch; the fc6 epilogue
# (bias + ReLU) and the whole fc7 layer run once per row tile on the last K
# step. The intermediate activation never leaves VMEM.
# --------------------------------------------------------------------------
def _two_mlp_head_kernel(x_ref, w6_ref, b6_ref, w7_ref, b7_ref, o_ref, acc_ref):
    k = pl.program_id(1)

    @pl.when(k == 0)
    def _():
        acc_ref[...] = jnp.zeros_like(acc_ref)

    # fc6 partial product for this K tile (MXU dtype = weight dtype, f32 acc).
    acc_ref[...] += jnp.dot(x_ref[...].astype(w6_ref.dtype), w6_ref[...],
                            preferred_element_type=jnp.float32)

    @pl.when(k == pl.num_programs(1) - 1)
    def _():
        # fc6 epilogue written back into the accumulator (no extra temporary).
        acc_ref[...] = jnp.maximum(acc_ref[...] + b6_ref[...], 0.0)
        h2 = jnp.dot(acc_ref[...].astype(w7_ref.dtype), w7_ref[...],
                     preferred_element_type=jnp.float32)
        o_ref[...] = jnp.maximum(h2 + b7_ref[...], 0.0).astype(o_ref.dtype)


# --------------------------------------------------------------------------
# One-time parameter preparation (hoisted out of the forward path).
# --------------------------------------------------------------------------
def prepare_two_mlp_head_params(w6, b6, w7, b7, *, weight_dtype=jnp.bfloat16,
                                rep_align=256):
    """Pad + cast the weights once.  Call at init, reuse for every forward.

    w6: (in_features, rep), b6: (rep,), w7: (rep, rep), b7: (rep,)
    weight_dtype: dtype streamed into the MXU (bf16 default: halves the
                  HBM weight stream on all of v5e/v6e/v7x; pass jnp.float32
                  for exact nn.Linear semantics).  Biases / accumulation /
                  epilogue stay f32 either way.
    """
    in_features, rep = w6.shape
    rep_pad = _round_up(rep, rep_align)
    k_pad = _round_up(in_features, 128)

    w6_p = jnp.pad(w6, ((0, k_pad - in_features), (0, rep_pad - rep))
                   ).astype(weight_dtype)
    w7_p = jnp.pad(w7, ((0, rep_pad - rep), (0, rep_pad - rep))
                   ).astype(weight_dtype)
    b6_p = jnp.pad(b6, (0, rep_pad - rep)).astype(jnp.float32).reshape(1, rep_pad)
    b7_p = jnp.pad(b7, (0, rep_pad - rep)).astype(jnp.float32).reshape(1, rep_pad)

    return {
        "w6": w6_p, "b6": b6_p, "w7": w7_p, "b7": b7_p,
        "in_features": in_features, "rep": rep,
        "k_pad": k_pad, "rep_pad": rep_pad,
    }


# --------------------------------------------------------------------------
# Tile sizing helpers.
# --------------------------------------------------------------------------
def _tk_candidates(k_pad, cap=2048):
    """128-multiple divisors of k_pad, ascending, capped (no ragged K step)."""
    cands = [d for d in range(128, min(k_pad, cap) + 1, 128) if k_pad % d == 0]
    return cands if cands else [min(k_pad, cap)]


def _vmem_estimate(tm, tk, rep_pad, x_bytes, w_bytes, out_bytes):
    x_tile = tm * tk * x_bytes * 2                 # double buffered
    w6_tile = tk * rep_pad * w_bytes * 2           # double buffered (streamed)
    w7 = rep_pad * rep_pad * w_bytes * 1           # Buffered(1) resident
    biases = 2 * rep_pad * 4                       # Buffered(1) residents
    out_tile = tm * rep_pad * out_bytes * 2        # double buffered
    acc = tm * rep_pad * 4                         # f32 scratch
    return x_tile + w6_tile + w7 + biases + out_tile + acc


# --------------------------------------------------------------------------
# Forward.
# --------------------------------------------------------------------------
def two_mlp_head(x_nchw, params, *, tm=None, tk=None,
                 vmem_budget_bytes=40 * 1024 * 1024):
    """TwoMLPHead forward using prepared params.  Returns (N, rep) in x dtype."""
    n = x_nchw.shape[0]
    x_flat = x_nchw.reshape(n, -1)                 # == torch flatten(start_dim=1)
    in_features = params["in_features"]
    rep = params["rep"]
    k_pad = params["k_pad"]
    rep_pad = params["rep_pad"]
    assert x_flat.shape[1] == in_features, "input feature size mismatch"
    out_dtype = x_flat.dtype

    x_bytes = jnp.dtype(x_flat.dtype).itemsize
    w_bytes = jnp.dtype(params["w6"].dtype).itemsize
    out_bytes = jnp.dtype(out_dtype).itemsize

    # ---- row tile: single tile for small batches, >=2 tiles (MXU aligned)
    # for larger batches so v7x's two TensorCores both get work. -------------
    n_pad = _round_up(max(n, 1), 8)
    if tm is None:
        if n_pad <= 256:
            tm = n_pad
        else:
            tm = min(1024, _round_up(pl.cdiv(n_pad, 2), 8))
    tm = max(8, _round_up(tm, 8))

    # ---- K tile: largest 128-multiple divisor of k_pad (<=2048). -----------
    cands = _tk_candidates(k_pad)
    if tk is None:
        tk = cands[-1]
    elif k_pad % tk != 0:
        tk = cands[-1]

    # ---- shrink to VMEM budget (matters for big tm/tk; v7x has 64 MiB). ----
    while _vmem_estimate(tm, tk, rep_pad, x_bytes, w_bytes, out_bytes) \
            > vmem_budget_bytes:
        smaller = [d for d in cands if d < tk]
        if smaller:
            tk = smaller[-1]
        elif tm > 8:
            tm = max(8, _round_up(tm // 2, 8))
        else:
            break

    n_pad = _round_up(n_pad, tm)

    # ---- pad x only when actually needed (zero K-padding contributes 0). ---
    if n_pad != n or k_pad != in_features:
        x_p = jnp.pad(x_flat, ((0, n_pad - n), (0, k_pad - in_features)))
    else:
        x_p = x_flat

    grid = (n_pad // tm, k_pad // tk)              # reduction axis last

    est = _vmem_estimate(tm, tk, rep_pad, x_bytes, w_bytes, out_bytes)
    vmem_limit = int(min(max(est + (16 << 20), 32 << 20), 56 << 20))

    out = pl.pallas_call(
        _two_mlp_head_kernel,
        out_shape=jax.ShapeDtypeStruct((n_pad, rep_pad), out_dtype),
        grid_spec=pltpu.PrefetchScalarGridSpec(
            num_scalar_prefetch=0,
            grid=grid,
            in_specs=[
                # x tile: streamed over rows and K.
                pl.BlockSpec((tm, tk), lambda i, k: (i, k)),
                # w6: streamed over K, re-fetched once per row tile.
                pl.BlockSpec((tk, rep_pad), lambda i, k: (k, 0)),
                # Residents: fetched once, single-buffered.
                pl.BlockSpec((1, rep_pad), lambda i, k: (0, 0),
                             pipeline_mode=pl.Buffered(1)),            # b6
                pl.BlockSpec((rep_pad, rep_pad), lambda i, k: (0, 0),
                             pipeline_mode=pl.Buffered(1)),            # w7
                pl.BlockSpec((1, rep_pad), lambda i, k: (0, 0),
                             pipeline_mode=pl.Buffered(1)),            # b7
            ],
            # Output maps only to the row axis -> resident across K steps.
            out_specs=pl.BlockSpec((tm, rep_pad), lambda i, k: (i, 0)),
            scratch_shapes=[pltpu.VMEM((tm, rep_pad), jnp.float32)],   # fc6 acc
        ),
        compiler_params=pltpu.CompilerParams(
            dimension_semantics=("parallel", "arbitrary"),
            vmem_limit_bytes=vmem_limit),
    )(x_p, params["w6"], params["b6"], params["w7"], params["b7"])

    return out[:n, :rep]


def reference(x_nchw, w6, b6, w7, b7):
    x = x_nchw.reshape(x_nchw.shape[0], -1)
    x = jax.nn.relu(x @ w6 + b6)
    x = jax.nn.relu(x @ w7 + b7)
    return x


if __name__ == "__main__":
    # Small shapes consistent with the module: N=2, C=4, H=W=16
    # -> in_channels = 4*16*16 = 1024, representation_size = 32.
    N, C, H, W = 2, 4, 16, 16
    in_channels = C * H * W
    representation_size = 32

    key = jax.random.PRNGKey(0)
    kx, k6w, k6b, k7w, k7b = jax.random.split(key, 5)

    x = jax.random.normal(kx, (N, C, H, W), dtype=jnp.float32)
    w6 = jax.random.normal(k6w, (in_channels, representation_size),
                           dtype=jnp.float32) * 0.02
    b6 = jax.random.normal(k6b, (representation_size,), dtype=jnp.float32) * 0.01
    w7 = jax.random.normal(k7w, (representation_size, representation_size),
                           dtype=jnp.float32) * 0.02
    b7 = jax.random.normal(k7b, (representation_size,), dtype=jnp.float32) * 0.01

    ref = reference(x, w6, b6, w7, b7)

    # One-time parameter prep (out of the steady-state forward path).
    params_f32 = jax.block_until_ready(
        prepare_two_mlp_head_params(w6, b6, w7, b7, weight_dtype=jnp.float32))
    params_bf16 = jax.block_until_ready(
        prepare_two_mlp_head_params(w6, b6, w7, b7))   # bf16 default

    # Exact (f32 weight) path — tight tolerance vs the PyTorch semantics.
    out_f32 = jax.block_until_ready(two_mlp_head(x, params_f32))
    assert out_f32.shape == (N, representation_size)
    assert jnp.allclose(out_f32, ref, atol=1e-4, rtol=1e-4), "f32 mismatch"

    # Default bf16 weight-streaming path — looser tolerance.
    out_bf16 = jax.block_until_ready(two_mlp_head(x, params_bf16))
    assert out_bf16.shape == (N, representation_size)
    assert jnp.allclose(out_bf16, ref, atol=5e-2, rtol=5e-2), "bf16 mismatch"

    print("KERNEL_OK")
</pallas_src>

<mosaic_0001>
module attributes {stable_mosaic.version = 11 : i64} {
  func.func @_two_mlp_head_kernel(%arg0: i32, %arg1: i32, %arg2: memref<8x1024xf32, #tpu.memory_space<vmem>>, %arg3: memref<1024x256xf32, #tpu.memory_space<vmem>>, %arg4: memref<1x256xf32, #tpu.memory_space<vmem>>, %arg5: memref<256x256xf32, #tpu.memory_space<vmem>>, %arg6: memref<1x256xf32, #tpu.memory_space<vmem>>, %arg7: memref<8x256xf32, #tpu.memory_space<vmem>>, %arg8: memref<8x256xf32, #tpu.memory_space<vmem>>) attributes {dimension_semantics = [#tpu.dimension_semantics<parallel>, #tpu.dimension_semantics<arbitrary>], iteration_bounds = array<i64: 1, 1>, scalar_prefetch = 0 : i64, scratch_operands = 1 : i64, tpu.core_type = #tpu.core_type<tc>, window_params = [{transform_indices = @transform_0, window_bounds = array<i64: 8, 1024>}, {transform_indices = @transform_1, window_bounds = array<i64: 1024, 256>}, {pipeline_mode = #tpu.pipeline_mode<synchronous>, transform_indices = @transform_2, window_bounds = array<i64: 1, 256>}, {pipeline_mode = #tpu.pipeline_mode<synchronous>, transform_indices = @transform_3, window_bounds = array<i64: 256, 256>}, {pipeline_mode = #tpu.pipeline_mode<synchronous>, transform_indices = @transform_4, window_bounds = array<i64: 1, 256>}, {transform_indices = @transform_5, window_bounds = array<i64: 8, 256>}]} {
    %c0_i32 = arith.constant 0 : i32
    %0 = arith.cmpi eq, %arg1, %c0_i32 : i32
    %1 = arith.extui %0 : i1 to i32
    %c0_i32_0 = arith.constant 0 : i32
    %2 = arith.cmpi ne, %1, %c0_i32_0 : i32
    scf.if %2 {
      %cst_10 = arith.constant 0.000000e+00 : f32
      %12 = vector.broadcast %cst_10 : f32 to vector<8x256xf32>
      %c0_11 = arith.constant 0 : index
      %c0_12 = arith.constant 0 : index
      %13 = vector.load %arg8[%c0_11, %c0_12] : memref<8x256xf32, #tpu.memory_space<vmem>>, vector<8x256xf32>
      tpu.vector_store %arg8[%c0_11, %c0_12], %12 {strides = array<i32>} : memref<8x256xf32, #tpu.memory_space<vmem>>, vector<8x256xf32>,
    } else {
    }
    %c0 = arith.constant 0 : index
    %c0_1 = arith.constant 0 : index
    %3 = vector.load %arg8[%c0, %c0_1] : memref<8x256xf32, #tpu.memory_space<vmem>>, vector<8x256xf32>
    %c0_2 = arith.constant 0 : index
    %c0_3 = arith.constant 0 : index
    %4 = vector.load %arg2[%c0_2, %c0_3] : memref<8x1024xf32, #tpu.memory_space<vmem>>, vector<8x1024xf32>
    %c0_4 = arith.constant 0 : index
    %c0_5 = arith.constant 0 : index
    %5 = vector.load %arg3[%c0_4, %c0_5] : memref<1024x256xf32, #tpu.memory_space<vmem>>, vector<1024x256xf32>
    %cst = arith.constant dense<0.000000e+00> : vector<8x256xf32>
    %6 = tpu.matmul %4, %5, %cst {dimension_numbers = #tpu.dot_dimension_numbers<[1], [0], [0], [1], [0, 0, 1, 1], [], []>} : vector<8x1024xf32>, vector<1024x256xf32>, vector<8x256xf32> -> vector<8x256xf32>
    %7 = arith.addf %3, %6 : vector<8x256xf32>
    %c0_6 = arith.constant 0 : index
    %c0_7 = arith.constant 0 : index
    %8 = vector.load %arg8[%c0_6, %c0_7] : memref<8x256xf32, #tpu.memory_space<vmem>>, vector<8x256xf32>
    tpu.vector_store %arg8[%c0_6, %c0_7], %7 {strides = array<i32>} : memref<8x256xf32, #tpu.memory_space<vmem>>, vector<8x256xf32>,
    %c0_i32_8 = arith.constant 0 : i32
    %9 = arith.cmpi eq, %arg1, %c0_i32_8 : i32
    %10 = arith.extui %9 : i1 to i32
    %c0_i32_9 = arith.constant 0 : i32
    %11 = arith.cmpi ne, %10, %c0_i32_9 : i32
    scf.if %11 {
      %c0_10 = arith.constant 0 : index
      %c0_11 = arith.constant 0 : index
      %12 = vector.load %arg8[%c0_10, %c0_11] : memref<8x256xf32, #tpu.memory_space<vmem>>, vector<8x256xf32>
      %c0_12 = arith.constant 0 : index
      %c0_13 = arith.constant 0 : index
      %13 = vector.load %arg4[%c0_12, %c0_13] : memref<1x256xf32, #tpu.memory_space<vmem>>, vector<1x256xf32>
      %14 = vector.broadcast %13 : vector<1x256xf32> to vector<8x256xf32>
      %15 = arith.addf %12, %14 : vector<8x256xf32>
      %cst_14 = arith.constant 0.000000e+00 : f32
      %16 = vector.broadcast %cst_14 : f32 to vector<8x256xf32>
      %17 = arith.maximumf %15, %16 : vector<8x256xf32>
      %c0_15 = arith.constant 0 : index
      %c0_16 = arith.constant 0 : index
      %18 = vector.load %arg8[%c0_15, %c0_16] : memref<8x256xf32, #tpu.memory_space<vmem>>, vector<8x256xf32>
      tpu.vector_store %arg8[%c0_15, %c0_16], %17 {strides = array<i32>} : memref<8x256xf32, #tpu.memory_space<vmem>>, vector<8x256xf32>,
      %c0_17 = arith.constant 0 : index
      %c0_18 = arith.constant 0 : index
      %19 = vector.load %arg8[%c0_17, %c0_18] : memref<8x256xf32, #tpu.memory_space<vmem>>, vector<8x256xf32>
      %c0_19 = arith.constant 0 : index
      %c0_20 = arith.constant 0 : index
      %20 = vector.load %arg5[%c0_19, %c0_20] : memref<256x256xf32, #tpu.memory_space<vmem>>, vector<256x256xf32>
      %cst_21 = arith.constant dense<0.000000e+00> : vector<8x256xf32>
      %21 = tpu.matmul %19, %20, %cst_21 {dimension_numbers = #tpu.dot_dimension_numbers<[1], [0], [0], [1], [0, 0, 1, 1], [], []>} : vector<8x256xf32>, vector<256x256xf32>, vector<8x256xf32> -> vector<8x256xf32>
      %c0_22 = arith.constant 0 : index
      %c0_23 = arith.constant 0 : index
      %22 = vector.load %arg6[%c0_22, %c0_23] : memref<1x256xf32, #tpu.memory_space<vmem>>, vector<1x256xf32>
      %23 = vector.broadcast %22 : vector<1x256xf32> to vector<8x256xf32>
      %24 = arith.addf %21, %23 : vector<8x256xf32>
      %cst_24 = arith.constant 0.000000e+00 : f32
      %25 = vector.broadcast %cst_24 : f32 to vector<8x256xf32>
      %26 = arith.maximumf %24, %25 : vector<8x256xf32>
      %c0_25 = arith.constant 0 : index
      %c0_26 = arith.constant 0 : index
      %27 = vector.load %arg7[%c0_25, %c0_26] : memref<8x256xf32, #tpu.memory_space<vmem>>, vector<8x256xf32>
      tpu.vector_store %arg7[%c0_25, %c0_26], %26 {strides = array<i32>} : memref<8x256xf32, #tpu.memory_space<vmem>>, vector<8x256xf32>,
    } else {
    }
    return
  }
  func.func @transform_0(%arg0: i32, %arg1: i32) -> (i32, i32) {
    %c0_i32 = arith.constant 0 : i32
    return %arg0, %arg1 : i32, i32
  }
  func.func @transform_1(%arg0: i32, %arg1: i32) -> (i32, i32) {
    %c0_i32 = arith.constant 0 : i32
    %c0_i32_0 = arith.constant 0 : i32
    return %arg1, %c0_i32 : i32, i32
  }
  func.func @transform_2(%arg0: i32, %arg1: i32) -> (i32, i32) {
    %c0_i32 = arith.constant 0 : i32
    %c0_i32_0 = arith.constant 0 : i32
    %c0_i32_1 = arith.constant 0 : i32
    return %c0_i32, %c0_i32_0 : i32, i32
  }
  func.func @transform_3(%arg0: i32, %arg1: i32) -> (i32, i32) {
    %c0_i32 = arith.constant 0 : i32
    %c0_i32_0 = arith.constant 0 : i32
    %c0_i32_1 = arith.constant 0 : i32
    return %c0_i32, %c0_i32_0 : i32, i32
  }
  func.func @transform_4(%arg0: i32, %arg1: i32) -> (i32, i32) {
    %c0_i32 = arith.constant 0 : i32
    %c0_i32_0 = arith.constant 0 : i32
    %c0_i32_1 = arith.constant 0 : i32
    return %c0_i32, %c0_i32_0 : i32, i32
  }
  func.func @transform_5(%arg0: i32, %arg1: i32) -> (i32, i32) {
    %c0_i32 = arith.constant 0 : i32
    %c0_i32_0 = arith.constant 0 : i32
    return %arg0, %c0_i32 : i32, i32
  }
}

</mosaic_0001>

<bundles_post_ra>
// kernel: tpu_custom_call.1
= control target key start
LH: loop header
LB: loop body
LE: loop exit
PB: predicated region body
PF: predicated region fallthrough
CT: control target
= control target key end

     0   :  { %10 = vsyncpa [#allocation4], 0  ;;  %s958_s0 = inlined_call_operand.hbm [shape: f32[8,1024], index: 0, kind: input, shape index: {}]   ;;  %s959_s1 = inlined_call_operand.hbm [shape: f32[1024,256], index: 1, kind: input, shape index: {}]   ;;  %s960_s2 = inlined_call_operand.vmem [shape: f32[1,256], index: 2, kind: input, shape index: {}]   ;;  %s961_s3 = inlined_call_operand.hbm [shape: f32[256,256], index: 3, kind: input, shape index: {}]   ;;  %s962_s4 = inlined_call_operand.vmem [shape: f32[1,256], index: 4, kind: input, shape index: {}]   ;;  %s963_s5 = inlined_call_operand.hbm [shape: f32[8,256], index: 5, kind: output, shape index: {}]  }
   0x1   :  { %11 = vsyncpa [#allocation7], 0 }
   0x2   :  { %12 = vsyncpa [#allocation5], 0  ;;  %s904_s18 = smov [#allocation6]  }
   0x3   :  { %s28_s19 = sshll.u32 %s904_s18, 4  ;;  %s29_s19 = int_to_ptr.vmem [resolvable:$true] %s28_s19 }
   0x4   :  { %s826_s20 = scalar_lea.vmem %s29_s19, 32768  ;;  %p831_p1 = scmp.lt.s32.totalorder %s29_s19, %s29_s19 }
   0x5   :  { %p827_p0 = scmp.ne.s32.totalorder %s29_s19, %s826_s20  ;;  %p832_p2 = scmp.lt.s32.totalorder %s826_s20, %s826_s20 }
   0x7   :  { %p833_p3 = por %p832_p2, %p831_p1 }
   0x9   :  { %p834_p4 = pnand %p833_p3, %p827_p0 }
   0xb   :  { %837 = shalt.err (!%p834_p4)
}
   0xc   :  { %s905_s21 = smov 256   ;;  %s906_s22 = smov 16  }
   0xd   :  { %34 = dma.hbm_to_vmem [thread:$0]  %s959_s1, 32768, %s29_s19, [#allocation7], %s905_s21, %s905_s21, %s906_s22  }
   0xe   :  { %s907_s25 = smov [#allocation3]   ;;  %s908_s27 = smov [#allocation8]  }
   0xf   :  { %s19_s26 = sshll.u32 %s907_s25, 4  ;;  %s42_s28 = sshll.u32 %s908_s27, 4  ;;  %s20_s26 = int_to_ptr.vmem [resolvable:$true] %s19_s26  ;;  %s43_s28 = int_to_ptr.vmem [resolvable:$true] %s42_s28 }
  0x10   :  { %s846_s29 = scalar_lea.vmem %s20_s26, 1024  ;;  %p851_p6 = scmp.lt.s32.totalorder %s20_s26, %s20_s26 }
  0x11   :  { %p847_p5 = scmp.ne.s32.totalorder %s20_s26, %s846_s29  ;;  %p852_p7 = scmp.lt.s32.totalorder %s846_s29, %s846_s29 }
  0x13   :  { %p853_p8 = por %p852_p7, %p851_p6 }
  0x15   :  { %p854_p9 = pnand %p853_p8, %p847_p5 }
  0x17   :  { %857 = shalt.err (!%p854_p9)
}
  0x18   :  { %22 = dma.hbm_to_vmem [thread:$0]  %s958_s0, 1024, %s20_s26, [#allocation4]  }
  0x19   :  { %s866_s7 = scalar_lea.vmem %s43_s28, 8192  ;;  %p871_p11 = scmp.lt.s32.totalorder %s43_s28, %s43_s28 }
  0x1a   :  { %p867_p10 = scmp.ne.s32.totalorder %s43_s28, %s866_s7  ;;  %p872_p12 = scmp.lt.s32.totalorder %s866_s7, %s866_s7 }
  0x1c   :  { %p873_p13 = por %p872_p12, %p871_p11 }
  0x1e   :  { %p874_p0 = pnand %p873_p13, %p867_p10 }
  0x20   :  { %877 = shalt.err (!%p874_p0)
}
  0x21   :  { %48 = dma.hbm_to_vmem [thread:$0]  %s961_s3, 8192, %s43_s28, [#allocation7], %s905_s21, %s905_s21, %s906_s22  }
  0x22   :  { %898 = dma.done.wait [#allocation4], 1024  }
  0x23   :  { %899 = vsyncadd [#allocation4], 4294966272 }
  0x24   :  { %900 = dma.done.wait [#allocation7], 40960  }
  0x25   :  { %901 = vsyncadd [#allocation7], 4294926336  ;;  %v107_v0 = vld [vmem:[#allocation6 + $0xf8] sm:$0xff]  ;;  %v106_v2 = vld [vmem:[#allocation6 + $0xf0] sm:$0xff]  ;;  %s909_s10 = smov [#allocation9]  }
  0x26   :  { %v171_v1 = vld [vmem:[#allocation6 + $0x2f8] sm:$0xff]  ;;  %332 = vmatprep.subr.mxu0 %v107_v0  ;;  %v170_v3 = vld [vmem:[#allocation6 + $0x2f0] sm:$0xff]  ;;  %v105_v4 = vld [vmem:[#allocation6 + $0xe8] sm:$0xff]  ;;  %s802_s11 = sshll.u32 %s909_s10, 4  ;;  %s803_s11 = int_to_ptr.vmem [resolvable:$true] %s802_s11 }
  0x27   :  { %403 = vmatprep.subr.mxu1 %v171_v1  ;;  %v169_v5 = vld [vmem:[#allocation6 + $0x2e8] sm:$0xff]  ;;  %333 = vmatpush1.msra.mxu0 %v106_v2  ;;  %v104_v6 = vld [vmem:[#allocation6 + $0xe0] sm:$0xff]  ;;  %v103_v8 = vld [vmem:[#allocation6 + $0xd8] sm:$0xff]  ;;  %s878_s12 = scalar_lea.vmem %s803_s11, 256  ;;  %p883_p2 = scmp.lt.s32.totalorder %s803_s11, %s803_s11 }
  0x28   :  { %404 = vmatpush1.msra.mxu1 %v170_v3  ;;  %v168_v7 = vld [vmem:[#allocation6 + $0x2e0] sm:$0xff]  ;;  %334 = vmatprep.subr.mxu0 %v105_v4  ;;  %v167_v9 = vld [vmem:[#allocation6 + $0x2d8] sm:$0xff]  ;;  %v102_v10 = vld [vmem:[#allocation6 + $0xd0] sm:$0xff]  ;;  %p879_p1 = scmp.ne.s32.totalorder %s803_s11, %s878_s12  ;;  %p884_p3 = scmp.lt.s32.totalorder %s878_s12, %s878_s12 }
  0x29   :  { %405 = vmatprep.subr.mxu1 %v169_v5  ;;  %v166_v11 = vld [vmem:[#allocation6 + $0x2d0] sm:$0xff]  ;;  %335 = vmatpush1.msra.mxu0 %v104_v6  ;;  %v101_v12 = vld [vmem:[#allocation6 + $0xc8] sm:$0xff]  ;;  %v100_v14 = vld [vmem:[#allocation6 + $0xc0] sm:$0xff] }
  0x2a   :  { %406 = vmatpush1.msra.mxu1 %v168_v7  ;;  %v165_v13 = vld [vmem:[#allocation6 + $0x2c8] sm:$0xff]  ;;  %336 = vmatprep.subr.mxu0 %v103_v8  ;;  %v164_v15 = vld [vmem:[#allocation6 + $0x2c0] sm:$0xff]  ;;  %v99_v16 = vld [vmem:[#allocation6 + $0xb8] sm:$0xff]  ;;  %p885_p4 = por %p884_p3, %p883_p2 }
  0x2b   :  { %407 = vmatprep.subr.mxu1 %v167_v9  ;;  %337 = vmatpush1.msra.mxu0 %v102_v10  ;;  %v163_v17 = vld [vmem:[#allocation6 + $0x2b8] sm:$0xff]  ;;  %v98_v18 = vld [vmem:[#allocation6 + $0xb0] sm:$0xff]  ;;  %v97_v20 = vld [vmem:[#allocation6 + $0xa8] sm:$0xff] }
  0x2c   :  { %408 = vmatpush1.msra.mxu1 %v166_v11  ;;  %338 = vmatprep.subr.mxu0 %v101_v12  ;;  %v162_v19 = vld [vmem:[#allocation6 + $0x2b0] sm:$0xff]  ;;  %v161_v21 = vld [vmem:[#allocation6 + $0x2a8] sm:$0xff]  ;;  %v96_v22 = vld [vmem:[#allocation6 + $0xa0] sm:$0xff]  ;;  %p886_p5 = pnand %p885_p4, %p879_p1 }
  0x2d   :  { %409 = vmatprep.subr.mxu1 %v165_v13  ;;  %339 = vmatpush1.msra.mxu0 %v100_v14  ;;  %v160_v23 = vld [vmem:[#allocation6 + $0x2a0] sm:$0xff]  ;;  %v95_v24 = vld [vmem:[#allocation6 + $0x98] sm:$0xff]  ;;  %v94_v26 = vld [vmem:[#allocation6 + $0x90] sm:$0xff] }
  0x2e   :  { %410 = vmatpush1.msra.mxu1 %v164_v15  ;;  %340 = vmatprep.subr.mxu0 %v99_v16  ;;  %v159_v25 = vld [vmem:[#allocation6 + $0x298] sm:$0xff]  ;;  %v158_v27 = vld [vmem:[#allocation6 + $0x290] sm:$0xff]  ;;  %v93_v28 = vld [vmem:[#allocation6 + $0x88] sm:$0xff] }
  0x2f   :  { %411 = vmatprep.subr.mxu1 %v163_v17  ;;  %341 = vmatpush1.msra.mxu0 %v98_v18  ;;  %v157_v29 = vld [vmem:[#allocation6 + $0x288] sm:$0xff]  ;;  %v92_v30 = vld [vmem:[#allocation6 + $0x80] sm:$0xff]  ;;  %v91_v32 = vld [vmem:[#allocation6 + $0x78] sm:$0xff] }
  0x30   :  { %412 = vmatpush1.msra.mxu1 %v162_v19  ;;  %342 = vmatprep.subr.mxu0 %v97_v20  ;;  %v156_v31 = vld [vmem:[#allocation6 + $0x280] sm:$0xff]  ;;  %v155_v33 = vld [vmem:[#allocation6 + $0x278] sm:$0xff]  ;;  %v90_v34 = vld [vmem:[#allocation6 + $0x70] sm:$0xff] }
  0x31   :  { %413 = vmatprep.subr.mxu1 %v161_v21  ;;  %343 = vmatpush1.msra.mxu0 %v96_v22  ;;  %v154_v35 = vld [vmem:[#allocation6 + $0x270] sm:$0xff]  ;;  %v89_v36 = vld [vmem:[#allocation6 + $0x68] sm:$0xff]  ;;  %v88_v38 = vld [vmem:[#allocation6 + $0x60] sm:$0xff] }
  0x32   :  { %414 = vmatpush1.msra.mxu1 %v160_v23  ;;  %344 = vmatprep.subr.mxu0 %v95_v24  ;;  %v153_v37 = vld [vmem:[#allocation6 + $0x268] sm:$0xff]  ;;  %v152_v39 = vld [vmem:[#allocation6 + $0x260] sm:$0xff]  ;;  %v87_v40 = vld [vmem:[#allocation6 + $0x58] sm:$0xff] }
  0x33   :  { %415 = vmatprep.subr.mxu1 %v159_v25  ;;  %345 = vmatpush1.msra.mxu0 %v94_v26  ;;  %v151_v41 = vld [vmem:[#allocation6 + $0x258] sm:$0xff]  ;;  %v86_v42 = vld [vmem:[#allocation6 + $0x50] sm:$0xff]  ;;  %v85_v44 = vld [vmem:[#allocation6 + $0x48] sm:$0xff] }
  0x34   :  { %416 = vmatpush1.msra.mxu1 %v158_v27  ;;  %346 = vmatprep.subr.mxu0 %v93_v28  ;;  %v150_v43 = vld [vmem:[#allocation6 + $0x250] sm:$0xff]  ;;  %v149_v45 = vld [vmem:[#allocation6 + $0x248] sm:$0xff]  ;;  %v84_v46 = vld [vmem:[#allocation6 + $0x40] sm:$0xff] }
  0x35   :  { %417 = vmatprep.subr.mxu1 %v157_v29  ;;  %347 = vmatpush1.msra.mxu0 %v92_v30  ;;  %v148_v47 = vld [vmem:[#allocation6 + $0x240] sm:$0xff]  ;;  %v83_v48 = vld [vmem:[#allocation6 + $0x38] sm:$0xff]  ;;  %v82_v50 = vld [vmem:[#allocation6 + $0x30] sm:$0xff] }
  0x36   :  { %418 = vmatpush1.msra.mxu1 %v156_v31  ;;  %348 = vmatprep.subr.mxu0 %v91_v32  ;;  %v147_v49 = vld [vmem:[#allocation6 + $0x238] sm:$0xff]  ;;  %v146_v51 = vld [vmem:[#allocation6 + $0x230] sm:$0xff]  ;;  %v81_v52 = vld [vmem:[#allocation6 + $0x28] sm:$0xff] }
  0x37   :  { %419 = vmatprep.subr.mxu1 %v155_v33  ;;  %349 = vmatpush1.msra.mxu0 %v90_v34  ;;  %v145_v53 = vld [vmem:[#allocation6 + $0x228] sm:$0xff]  ;;  %v80_v54 = vld [vmem:[#allocation6 + $0x20] sm:$0xff]  ;;  %v79_v56 = vld [vmem:[#allocation6 + $0x18] sm:$0xff] }
  0x38   :  { %420 = vmatpush1.msra.mxu1 %v154_v35  ;;  %350 = vmatprep.subr.mxu0 %v89_v36  ;;  %v144_v55 = vld [vmem:[#allocation6 + $0x220] sm:$0xff]  ;;  %v143_v57 = vld [vmem:[#allocation6 + $0x218] sm:$0xff]  ;;  %v78_v58 = vld [vmem:[#allocation6 + $0x10] sm:$0xff] }
  0x39   :  { %421 = vmatprep.subr.mxu1 %v153_v37  ;;  %351 = vmatpush1.msra.mxu0 %v88_v38  ;;  %v142_v59 = vld [vmem:[#allocation6 + $0x210] sm:$0xff]  ;;  %v77_v60 = vld [vmem:[#allocation6 + $0x8] sm:$0xff]  ;;  %v76_v62 = vld [vmem:[#allocation6] sm:$0xff] }
  0x3a   :  { %422 = vmatpush1.msra.mxu1 %v152_v39  ;;  %352 = vmatprep.subr.mxu0 %v87_v40  ;;  %v141_v61 = vld [vmem:[#allocation6 + $0x208] sm:$0xff]  ;;  %v140_v63 = vld [vmem:[#allocation6 + $0x200] sm:$0xff]  ;;  %v139_v0 = vld [vmem:[#allocation6 + $0x1f8] sm:$0xff] }
  0x3b   :  { %423 = vmatprep.subr.mxu1 %v151_v41  ;;  %353 = vmatpush1.msra.mxu0 %v86_v42  ;;  %v203_v1 = vld [vmem:[#allocation6 + $0x3f8] sm:$0xff]  ;;  %v138_v2 = vld [vmem:[#allocation6 + $0x1f0] sm:$0xff]  ;;  %v137_v4 = vld [vmem:[#allocation6 + $0x1e8] sm:$0xff] }
  0x3c   :  { %424 = vmatpush1.msra.mxu1 %v150_v43  ;;  %354 = vmatprep.subr.mxu0 %v85_v44  ;;  %v202_v3 = vld [vmem:[#allocation6 + $0x3f0] sm:$0xff]  ;;  %v201_v5 = vld [vmem:[#allocation6 + $0x3e8] sm:$0xff]  ;;  %v136_v6 = vld [vmem:[#allocation6 + $0x1e0] sm:$0xff] }
  0x3d   :  { %425 = vmatprep.subr.mxu1 %v149_v45  ;;  %355 = vmatpush1.msra.mxu0 %v84_v46  ;;  %v200_v7 = vld [vmem:[#allocation6 + $0x3e0] sm:$0xff]  ;;  %v135_v8 = vld [vmem:[#allocation6 + $0x1d8] sm:$0xff]  ;;  %v134_v10 = vld [vmem:[#allocation6 + $0x1d0] sm:$0xff] }
  0x3e   :  { %426 = vmatpush1.msra.mxu1 %v148_v47  ;;  %356 = vmatprep.subr.mxu0 %v83_v48  ;;  %v199_v9 = vld [vmem:[#allocation6 + $0x3d8] sm:$0xff]  ;;  %v198_v11 = vld [vmem:[#allocation6 + $0x3d0] sm:$0xff]  ;;  %v133_v12 = vld [vmem:[#allocation6 + $0x1c8] sm:$0xff] }
  0x3f   :  { %427 = vmatprep.subr.mxu1 %v147_v49  ;;  %357 = vmatpush1.msra.mxu0 %v82_v50  ;;  %v197_v13 = vld [vmem:[#allocation6 + $0x3c8] sm:$0xff]  ;;  %v132_v14 = vld [vmem:[#allocation6 + $0x1c0] sm:$0xff]  ;;  %v131_v16 = vld [vmem:[#allocation6 + $0x1b8] sm:$0xff] }
  0x40   :  { %428 = vmatpush1.msra.mxu1 %v146_v51  ;;  %358 = vmatprep.subr.mxu0 %v81_v52  ;;  %v196_v15 = vld [vmem:[#allocation6 + $0x3c0] sm:$0xff]  ;;  %v195_v17 = vld [vmem:[#allocation6 + $0x3b8] sm:$0xff]  ;;  %v130_v18 = vld [vmem:[#allocation6 + $0x1b0] sm:$0xff] }
  0x41   :  { %429 = vmatprep.subr.mxu1 %v145_v53  ;;  %359 = vmatpush1.msra.mxu0 %v80_v54  ;;  %v194_v19 = vld [vmem:[#allocation6 + $0x3b0] sm:$0xff]  ;;  %v129_v20 = vld [vmem:[#allocation6 + $0x1a8] sm:$0xff]  ;;  %v128_v22 = vld [vmem:[#allocation6 + $0x1a0] sm:$0xff] }
  0x42   :  { %430 = vmatpush1.msra.mxu1 %v144_v55  ;;  %360 = vmatprep.subr.mxu0 %v79_v56  ;;  %v193_v21 = vld [vmem:[#allocation6 + $0x3a8] sm:$0xff]  ;;  %v192_v23 = vld [vmem:[#allocation6 + $0x3a0] sm:$0xff]  ;;  %v127_v24 = vld [vmem:[#allocation6 + $0x198] sm:$0xff] }
  0x43   :  { %431 = vmatprep.subr.mxu1 %v143_v57  ;;  %361 = vmatpush1.msra.mxu0 %v78_v58  ;;  %v191_v25 = vld [vmem:[#allocation6 + $0x398] sm:$0xff]  ;;  %v126_v26 = vld [vmem:[#allocation6 + $0x190] sm:$0xff]  ;;  %v125_v28 = vld [vmem:[#allocation6 + $0x188] sm:$0xff] }
  0x44   :  { %432 = vmatpush1.msra.mxu1 %v142_v59  ;;  %362 = vmatprep.subr.mxu0 %v77_v60  ;;  %v190_v27 = vld [vmem:[#allocation6 + $0x390] sm:$0xff]  ;;  %v189_v29 = vld [vmem:[#allocation6 + $0x388] sm:$0xff]  ;;  %v124_v30 = vld [vmem:[#allocation6 + $0x180] sm:$0xff] }
  0x45   :  { %433 = vmatprep.subr.mxu1 %v141_v61  ;;  %363 = vmatpush1.msra.mxu0 %v76_v62  ;;  %v188_v31 = vld [vmem:[#allocation6 + $0x380] sm:$0xff]  ;;  %v123_v32 = vld [vmem:[#allocation6 + $0x178] sm:$0xff]  ;;  %v122_v34 = vld [vmem:[#allocation6 + $0x170] sm:$0xff] }
  0x46   :  { %434 = vmatpush1.msra.mxu1 %v140_v63  ;;  %364 = vmatprep.subr.mxu0 %v139_v0  ;;  %v187_v33 = vld [vmem:[#allocation6 + $0x378] sm:$0xff]  ;;  %v186_v35 = vld [vmem:[#allocation6 + $0x370] sm:$0xff]  ;;  %v121_v36 = vld [vmem:[#allocation6 + $0x168] sm:$0xff] }
  0x47   :  { %435 = vmatprep.subr.mxu1 %v203_v1  ;;  %365 = vmatpush2.msra.mxu0 %v138_v2  ;;  %v185_v37 = vld [vmem:[#allocation6 + $0x368] sm:$0xff]  ;;  %v120_v38 = vld [vmem:[#allocation6 + $0x160] sm:$0xff]  ;;  %v119_v40 = vld [vmem:[#allocation6 + $0x158] sm:$0xff] }
  0x48   :  { %436 = vmatpush2.msra.mxu1 %v202_v3  ;;  %366 = vmatprep.subr.mxu0 %v137_v4  ;;  %v184_v39 = vld [vmem:[#allocation6 + $0x360] sm:$0xff]  ;;  %v183_v41 = vld [vmem:[#allocation6 + $0x358] sm:$0xff]  ;;  %v118_v42 = vld [vmem:[#allocation6 + $0x150] sm:$0xff] }
  0x49   :  { %437 = vmatprep.subr.mxu1 %v201_v5  ;;  %367 = vmatpush2.msra.mxu0 %v136_v6  ;;  %v182_v43 = vld [vmem:[#allocation6 + $0x350] sm:$0xff]  ;;  %v117_v44 = vld [vmem:[#allocation6 + $0x148] sm:$0xff]  ;;  %v116_v46 = vld [vmem:[#allocation6 + $0x140] sm:$0xff] }
  0x4a   :  { %438 = vmatpush2.msra.mxu1 %v200_v7  ;;  %368 = vmatprep.subr.mxu0 %v135_v8  ;;  %v181_v45 = vld [vmem:[#allocation6 + $0x348] sm:$0xff]  ;;  %v180_v47 = vld [vmem:[#allocation6 + $0x340] sm:$0xff]  ;;  %v115_v48 = vld [vmem:[#allocation6 + $0x138] sm:$0xff] }
  0x4b   :  { %439 = vmatprep.subr.mxu1 %v199_v9  ;;  %369 = vmatpush2.msra.mxu0 %v134_v10  ;;  %v179_v49 = vld [vmem:[#allocation6 + $0x338] sm:$0xff]  ;;  %v114_v50 = vld [vmem:[#allocation6 + $0x130] sm:$0xff]  ;;  %v113_v52 = vld [vmem:[#allocation6 + $0x128] sm:$0xff] }
  0x4c   :  { %440 = vmatpush2.msra.mxu1 %v198_v11  ;;  %370 = vmatprep.subr.mxu0 %v133_v12  ;;  %v178_v51 = vld [vmem:[#allocation6 + $0x330] sm:$0xff]  ;;  %v177_v53 = vld [vmem:[#allocation6 + $0x328] sm:$0xff]  ;;  %v112_v54 = vld [vmem:[#allocation6 + $0x120] sm:$0xff] }
  0x4d   :  { %441 = vmatprep.subr.mxu1 %v197_v13  ;;  %371 = vmatpush2.msra.mxu0 %v132_v14  ;;  %v176_v55 = vld [vmem:[#allocation6 + $0x320] sm:$0xff]  ;;  %v111_v56 = vld [vmem:[#allocation6 + $0x118] sm:$0xff]  ;;  %v110_v58 = vld [vmem:[#allocation6 + $0x110] sm:$0xff] }
  0x4e   :  { %442 = vmatpush2.msra.mxu1 %v196_v15  ;;  %372 = vmatprep.subr.mxu0 %v131_v16  ;;  %v175_v57 = vld [vmem:[#allocation6 + $0x318] sm:$0xff]  ;;  %v174_v59 = vld [vmem:[#allocation6 + $0x310] sm:$0xff]  ;;  %v109_v60 = vld [vmem:[#allocation6 + $0x108] sm:$0xff] }
  0x4f   :  { %443 = vmatprep.subr.mxu1 %v195_v17  ;;  %373 = vmatpush2.msra.mxu0 %v130_v18  ;;  %v173_v61 = vld [vmem:[#allocation6 + $0x308] sm:$0xff]  ;;  %v108_v62 = vld [vmem:[#allocation6 + $0x100] sm:$0xff]  ;;  %v71_v1 = vld [vmem:[#allocation3 + $0x18] sm:$0xff] }
  0x50   :  { %444 = vmatpush2.msra.mxu1 %v194_v19  ;;  %374 = vmatprep.subr.mxu0 %v129_v20  ;;  %v69_v63 = vld [vmem:[#allocation3 + $0x8] sm:$0xff]  ;;  %v172_v0 = vld [vmem:[#allocation6 + $0x300] sm:$0xff]  ;;  %v70_v3 = vld [vmem:[#allocation3 + $0x10] sm:$0xff] }
  0x51   :  { %445 = vmatprep.subr.mxu1 %v193_v21  ;;  %375 = vmatpush2.msra.mxu0 %v128_v22  ;;  %v68_v2 = vld [vmem:[#allocation3] sm:$0xff]  ;;  %v235_v4 = vld [vmem:[#allocation6 + $0x4f8] sm:$0xff]  ;;  %v234_v6 = vld [vmem:[#allocation6 + $0x4f0] sm:$0xff] }
  0x52   :  { %446 = vmatpush2.msra.mxu1 %v192_v23  ;;  %376 = vmatprep.subr.mxu0 %v127_v24  ;;  %v299_v5 = vld [vmem:[#allocation6 + $0x6f8] sm:$0xff]  ;;  %v298_v7 = vld [vmem:[#allocation6 + $0x6f0] sm:$0xff]  ;;  %v233_v8 = vld [vmem:[#allocation6 + $0x4e8] sm:$0xff] }
  0x53   :  { %447 = vmatprep.subr.mxu1 %v191_v25  ;;  %377 = vmatpush2.msra.mxu0 %v126_v26  ;;  %v297_v9 = vld [vmem:[#allocation6 + $0x6e8] sm:$0xff]  ;;  %v232_v10 = vld [vmem:[#allocation6 + $0x4e0] sm:$0xff]  ;;  %v231_v12 = vld [vmem:[#allocation6 + $0x4d8] sm:$0xff] }
  0x54   :  { %448 = vmatpush2.msra.mxu1 %v190_v27  ;;  %378 = vmatprep.subr.mxu0 %v125_v28  ;;  %v296_v11 = vld [vmem:[#allocation6 + $0x6e0] sm:$0xff]  ;;  %v295_v13 = vld [vmem:[#allocation6 + $0x6d8] sm:$0xff]  ;;  %v230_v14 = vld [vmem:[#allocation6 + $0x4d0] sm:$0xff] }
  0x55   :  { %449 = vmatprep.subr.mxu1 %v189_v29  ;;  %379 = vmatpush2.msra.mxu0 %v124_v30  ;;  %v294_v15 = vld [vmem:[#allocation6 + $0x6d0] sm:$0xff]  ;;  %v229_v16 = vld [vmem:[#allocation6 + $0x4c8] sm:$0xff]  ;;  %v228_v18 = vld [vmem:[#allocation6 + $0x4c0] sm:$0xff] }
  0x56   :  { %450 = vmatpush2.msra.mxu1 %v188_v31  ;;  %380 = vmatprep.subr.mxu0 %v123_v32  ;;  %v293_v17 = vld [vmem:[#allocation6 + $0x6c8] sm:$0xff]  ;;  %v292_v19 = vld [vmem:[#allocation6 + $0x6c0] sm:$0xff]  ;;  %v227_v20 = vld [vmem:[#allocation6 + $0x4b8] sm:$0xff] }
  0x57   :  { %451 = vmatprep.subr.mxu1 %v187_v33  ;;  %381 = vmatpush2.msra.mxu0 %v122_v34  ;;  %v291_v21 = vld [vmem:[#allocation6 + $0x6b8] sm:$0xff]  ;;  %v226_v22 = vld [vmem:[#allocation6 + $0x4b0] sm:$0xff]  ;;  %v225_v24 = vld [vmem:[#allocation6 + $0x4a8] sm:$0xff] }
  0x58   :  { %452 = vmatpush2.msra.mxu1 %v186_v35  ;;  %382 = vmatprep.subr.mxu0 %v121_v36  ;;  %v290_v23 = vld [vmem:[#allocation6 + $0x6b0] sm:$0xff]  ;;  %v289_v25 = vld [vmem:[#allocation6 + $0x6a8] sm:$0xff]  ;;  %v224_v26 = vld [vmem:[#allocation6 + $0x4a0] sm:$0xff] }
  0x59   :  { %453 = vmatprep.subr.mxu1 %v185_v37  ;;  %383 = vmatpush2.msra.mxu0 %v120_v38  ;;  %v288_v27 = vld [vmem:[#allocation6 + $0x6a0] sm:$0xff]  ;;  %v223_v28 = vld [vmem:[#allocation6 + $0x498] sm:$0xff]  ;;  %v222_v30 = vld [vmem:[#allocation6 + $0x490] sm:$0xff] }
  0x5a   :  { %454 = vmatpush2.msra.mxu1 %v184_v39  ;;  %384 = vmatprep.subr.mxu0 %v119_v40  ;;  %v287_v29 = vld [vmem:[#allocation6 + $0x698] sm:$0xff]  ;;  %v286_v31 = vld [vmem:[#allocation6 + $0x690] sm:$0xff]  ;;  %v221_v32 = vld [vmem:[#allocation6 + $0x488] sm:$0xff] }
  0x5b   :  { %455 = vmatprep.subr.mxu1 %v183_v41  ;;  %385 = vmatpush2.msra.mxu0 %v118_v42  ;;  %v285_v33 = vld [vmem:[#allocation6 + $0x688] sm:$0xff]  ;;  %v220_v34 = vld [vmem:[#allocation6 + $0x480] sm:$0xff]  ;;  %v219_v36 = vld [vmem:[#allocation6 + $0x478] sm:$0xff] }
  0x5c   :  { %456 = vmatpush2.msra.mxu1 %v182_v43  ;;  %386 = vmatprep.subr.mxu0 %v117_v44  ;;  %v284_v35 = vld [vmem:[#allocation6 + $0x680] sm:$0xff]  ;;  %v283_v37 = vld [vmem:[#allocation6 + $0x678] sm:$0xff]  ;;  %v218_v38 = vld [vmem:[#allocation6 + $0x470] sm:$0xff] }
  0x5d   :  { %457 = vmatprep.subr.mxu1 %v181_v45  ;;  %387 = vmatpush2.msra.mxu0 %v116_v46  ;;  %v282_v39 = vld [vmem:[#allocation6 + $0x670] sm:$0xff]  ;;  %v217_v40 = vld [vmem:[#allocation6 + $0x468] sm:$0xff]  ;;  %v216_v42 = vld [vmem:[#allocation6 + $0x460] sm:$0xff] }
  0x5e   :  { %458 = vmatpush2.msra.mxu1 %v180_v47  ;;  %388 = vmatprep.subr.mxu0 %v115_v48  ;;  %v281_v41 = vld [vmem:[#allocation6 + $0x668] sm:$0xff]  ;;  %v280_v43 = vld [vmem:[#allocation6 + $0x660] sm:$0xff]  ;;  %v215_v44 = vld [vmem:[#allocation6 + $0x458] sm:$0xff] }
  0x5f   :  { %459 = vmatprep.subr.mxu1 %v179_v49  ;;  %389 = vmatpush2.msra.mxu0 %v114_v50  ;;  %v279_v45 = vld [vmem:[#allocation6 + $0x658] sm:$0xff]  ;;  %v214_v46 = vld [vmem:[#allocation6 + $0x450] sm:$0xff]  ;;  %v213_v48 = vld [vmem:[#allocation6 + $0x448] sm:$0xff] }
  0x60   :  { %460 = vmatpush2.msra.mxu1 %v178_v51  ;;  %390 = vmatprep.subr.mxu0 %v113_v52  ;;  %v278_v47 = vld [vmem:[#allocation6 + $0x650] sm:$0xff]  ;;  %v277_v49 = vld [vmem:[#allocation6 + $0x648] sm:$0xff]  ;;  %v212_v50 = vld [vmem:[#allocation6 + $0x440] sm:$0xff] }
  0x61   :  { %461 = vmatprep.subr.mxu1 %v177_v53  ;;  %391 = vmatpush2.msra.mxu0 %v112_v54  ;;  %v276_v51 = vld [vmem:[#allocation6 + $0x640] sm:$0xff]  ;;  %v211_v52 = vld [vmem:[#allocation6 + $0x438] sm:$0xff]  ;;  %v210_v54 = vld [vmem:[#allocation6 + $0x430] sm:$0xff] }
  0x62   :  { %462 = vmatpush2.msra.mxu1 %v176_v55  ;;  %392 = vmatprep.subr.mxu0 %v111_v56  ;;  %v275_v53 = vld [vmem:[#allocation6 + $0x638] sm:$0xff]  ;;  %v274_v55 = vld [vmem:[#allocation6 + $0x630] sm:$0xff]  ;;  %v209_v56 = vld [vmem:[#allocation6 + $0x428] sm:$0xff] }
  0x63   :  { %463 = vmatprep.subr.mxu1 %v175_v57  ;;  %393 = vmatpush2.msra.mxu0 %v110_v58  ;;  %v273_v57 = vld [vmem:[#allocation6 + $0x628] sm:$0xff]  ;;  %v208_v58 = vld [vmem:[#allocation6 + $0x420] sm:$0xff] }
  0x64   :  { %464 = vmatpush2.msra.mxu1 %v174_v59  ;;  %394 = vmatprep.subr.mxu0 %v109_v60  ;;  %v272_v59 = vld [vmem:[#allocation6 + $0x620] sm:$0xff]  ;;  %v207_v60 = vld [vmem:[#allocation6 + $0x418] sm:$0xff] }
  0x65   :  { %465 = vmatprep.subr.mxu1 %v173_v61  ;;  %395 = vmatpush2.msra.mxu0 %v108_v62  ;;  %v271_v61 = vld [vmem:[#allocation6 + $0x618] sm:$0xff]  ;;  %v206_v62 = vld [vmem:[#allocation6 + $0x410] sm:$0xff] }
  0x66   :  { %396 = vmatprep.mubr.f32.mxu0 %v69_v63  ;;  %466 = vmatpush2.msra.mxu1 %v172_v0  ;;  %v270_v63 = vld [vmem:[#allocation6 + $0x610] sm:$0xff]  ;;  %v205_v0 = vld [vmem:[#allocation6 + $0x408] sm:$0xff] }
  0x67   :  { %467 = vmatprep.mubr.f32.mxu1 %v71_v1  ;;  %397 = vmatmul.mubr.f32.vlgmr.msra.gmra.mxu0 %v68_v2  ;;  %v269_v1 = vld [vmem:[#allocation6 + $0x608] sm:$0xff]  ;;  %v204_v2 = vld [vmem:[#allocation6 + $0x400] sm:$0xff] }
  0x68   :  { %468 = vmatmul.mubr.f32.vlgmr.msra.gmra.mxu1 %v70_v3  ;;  %474 = vmatprep.subr.mxu0 %v235_v4  ;;  %v268_v3 = vld [vmem:[#allocation6 + $0x600] sm:$0xff]  ;;  %v267_v4 = vld [vmem:[#allocation6 + $0x5f8] sm:$0xff] }
  0x69   :  { %545 = vmatprep.subr.mxu1 %v299_v5  ;;  %475 = vmatpush1.msra.mxu0 %v234_v6  ;;  %v331_v5 = vld [vmem:[#allocation6 + $0x7f8] sm:$0xff]  ;;  %v266_v6 = vld [vmem:[#allocation6 + $0x5f0] sm:$0xff] }
  0x6a   :  { %546 = vmatpush1.msra.mxu1 %v298_v7  ;;  %476 = vmatprep.subr.mxu0 %v233_v8  ;;  %v330_v7 = vld [vmem:[#allocation6 + $0x7f0] sm:$0xff]  ;;  %v265_v8 = vld [vmem:[#allocation6 + $0x5e8] sm:$0xff] }
  0x6b   :  { %547 = vmatprep.subr.mxu1 %v297_v9  ;;  %477 = vmatpush1.msra.mxu0 %v232_v10  ;;  %v329_v9 = vld [vmem:[#allocation6 + $0x7e8] sm:$0xff]  ;;  %v264_v10 = vld [vmem:[#allocation6 + $0x5e0] sm:$0xff] }
  0x6c   :  { %548 = vmatpush1.msra.mxu1 %v296_v11  ;;  %478 = vmatprep.subr.mxu0 %v231_v12  ;;  %v328_v11 = vld [vmem:[#allocation6 + $0x7e0] sm:$0xff]  ;;  %v263_v12 = vld [vmem:[#allocation6 + $0x5d8] sm:$0xff] }
  0x6d   :  { %549 = vmatprep.subr.mxu1 %v295_v13  ;;  %479 = vmatpush1.msra.mxu0 %v230_v14  ;;  %v327_v13 = vld [vmem:[#allocation6 + $0x7d8] sm:$0xff]  ;;  %v262_v14 = vld [vmem:[#allocation6 + $0x5d0] sm:$0xff] }
  0x6e   :  { %550 = vmatpush1.msra.mxu1 %v294_v15  ;;  %480 = vmatprep.subr.mxu0 %v229_v16  ;;  %v326_v15 = vld [vmem:[#allocation6 + $0x7d0] sm:$0xff]  ;;  %v261_v16 = vld [vmem:[#allocation6 + $0x5c8] sm:$0xff] }
  0x6f   :  { %551 = vmatprep.subr.mxu1 %v293_v17  ;;  %481 = vmatpush1.msra.mxu0 %v228_v18  ;;  %v325_v17 = vld [vmem:[#allocation6 + $0x7c8] sm:$0xff]  ;;  %v260_v18 = vld [vmem:[#allocation6 + $0x5c0] sm:$0xff] }
  0x70   :  { %552 = vmatpush1.msra.mxu1 %v292_v19  ;;  %482 = vmatprep.subr.mxu0 %v227_v20  ;;  %v324_v19 = vld [vmem:[#allocation6 + $0x7c0] sm:$0xff]  ;;  %v259_v20 = vld [vmem:[#allocation6 + $0x5b8] sm:$0xff] }
  0x71   :  { %553 = vmatprep.subr.mxu1 %v291_v21  ;;  %483 = vmatpush1.msra.mxu0 %v226_v22  ;;  %v323_v21 = vld [vmem:[#allocation6 + $0x7b8] sm:$0xff]  ;;  %v258_v22 = vld [vmem:[#allocation6 + $0x5b0] sm:$0xff] }
  0x72   :  { %554 = vmatpush1.msra.mxu1 %v290_v23  ;;  %484 = vmatprep.subr.mxu0 %v225_v24  ;;  %v322_v23 = vld [vmem:[#allocation6 + $0x7b0] sm:$0xff]  ;;  %v257_v24 = vld [vmem:[#allocation6 + $0x5a8] sm:$0xff] }
  0x73   :  { %555 = vmatprep.subr.mxu1 %v289_v25  ;;  %485 = vmatpush1.msra.mxu0 %v224_v26  ;;  %v321_v25 = vld [vmem:[#allocation6 + $0x7a8] sm:$0xff]  ;;  %v256_v26 = vld [vmem:[#allocation6 + $0x5a0] sm:$0xff] }
  0x74   :  { %556 = vmatpush1.msra.mxu1 %v288_v27  ;;  %486 = vmatprep.subr.mxu0 %v223_v28  ;;  %v320_v27 = vld [vmem:[#allocation6 + $0x7a0] sm:$0xff]  ;;  %v255_v28 = vld [vmem:[#allocation6 + $0x598] sm:$0xff] }
  0x75   :  { %557 = vmatprep.subr.mxu1 %v287_v29  ;;  %487 = vmatpush1.msra.mxu0 %v222_v30  ;;  %v319_v29 = vld [vmem:[#allocation6 + $0x798] sm:$0xff]  ;;  %v254_v30 = vld [vmem:[#allocation6 + $0x590] sm:$0xff] }
  0x76   :  { %558 = vmatpush1.msra.mxu1 %v286_v31  ;;  %488 = vmatprep.subr.mxu0 %v221_v32  ;;  %v318_v31 = vld [vmem:[#allocation6 + $0x790] sm:$0xff]  ;;  %v253_v32 = vld [vmem:[#allocation6 + $0x588] sm:$0xff] }
  0x77   :  { %559 = vmatprep.subr.mxu1 %v285_v33  ;;  %489 = vmatpush1.msra.mxu0 %v220_v34  ;;  %v317_v33 = vld [vmem:[#allocation6 + $0x788] sm:$0xff]  ;;  %v252_v34 = vld [vmem:[#allocation6 + $0x580] sm:$0xff] }
  0x78   :  { %560 = vmatpush1.msra.mxu1 %v284_v35  ;;  %490 = vmatprep.subr.mxu0 %v219_v36  ;;  %v316_v35 = vld [vmem:[#allocation6 + $0x780] sm:$0xff]  ;;  %v251_v36 = vld [vmem:[#allocation6 + $0x578] sm:$0xff] }
  0x79   :  { %561 = vmatprep.subr.mxu1 %v283_v37  ;;  %491 = vmatpush1.msra.mxu0 %v218_v38  ;;  %v315_v37 = vld [vmem:[#allocation6 + $0x778] sm:$0xff]  ;;  %v250_v38 = vld [vmem:[#allocation6 + $0x570] sm:$0xff] }
  0x7a   :  { %562 = vmatpush1.msra.mxu1 %v282_v39  ;;  %492 = vmatprep.subr.mxu0 %v217_v40  ;;  %v314_v39 = vld [vmem:[#allocation6 + $0x770] sm:$0xff]  ;;  %v249_v40 = vld [vmem:[#allocation6 + $0x568] sm:$0xff] }
  0x7b   :  { %563 = vmatprep.subr.mxu1 %v281_v41  ;;  %493 = vmatpush1.msra.mxu0 %v216_v42  ;;  %v313_v41 = vld [vmem:[#allocation6 + $0x768] sm:$0xff]  ;;  %v248_v42 = vld [vmem:[#allocation6 + $0x560] sm:$0xff] }
  0x7c   :  { %564 = vmatpush1.msra.mxu1 %v280_v43  ;;  %494 = vmatprep.subr.mxu0 %v215_v44  ;;  %v312_v43 = vld [vmem:[#allocation6 + $0x760] sm:$0xff]  ;;  %v247_v44 = vld [vmem:[#allocation6 + $0x558] sm:$0xff] }
  0x7d   :  { %565 = vmatprep.subr.mxu1 %v279_v45  ;;  %495 = vmatpush1.msra.mxu0 %v214_v46  ;;  %v311_v45 = vld [vmem:[#allocation6 + $0x758] sm:$0xff]  ;;  %v246_v46 = vld [vmem:[#allocation6 + $0x550] sm:$0xff] }
  0x7e   :  { %566 = vmatpush1.msra.mxu1 %v278_v47  ;;  %496 = vmatprep.subr.mxu0 %v213_v48  ;;  %v310_v47 = vld [vmem:[#allocation6 + $0x750] sm:$0xff]  ;;  %v245_v48 = vld [vmem:[#allocation6 + $0x548] sm:$0xff] }
  0x7f   :  { %567 = vmatprep.subr.mxu1 %v277_v49  ;;  %497 = vmatpush1.msra.mxu0 %v212_v50  ;;  %v309_v49 = vld [vmem:[#allocation6 + $0x748] sm:$0xff]  ;;  %v244_v50 = vld [vmem:[#allocation6 + $0x540] sm:$0xff] }
  0x80   :  { %568 = vmatpush1.msra.mxu1 %v276_v51  ;;  %498 = vmatprep.subr.mxu0 %v211_v52  ;;  %v308_v51 = vld [vmem:[#allocation6 + $0x740] sm:$0xff]  ;;  %v243_v52 = vld [vmem:[#allocation6 + $0x538] sm:$0xff] }
  0x81   :  { %569 = vmatprep.subr.mxu1 %v275_v53  ;;  %499 = vmatpush1.msra.mxu0 %v210_v54  ;;  %v307_v53 = vld [vmem:[#allocation6 + $0x738] sm:$0xff]  ;;  %v242_v54 = vld [vmem:[#allocation6 + $0x530] sm:$0xff] }
  0x82   :  { %570 = vmatpush1.msra.mxu1 %v274_v55  ;;  %500 = vmatprep.subr.mxu0 %v209_v56  ;;  %v306_v55 = vld [vmem:[#allocation6 + $0x730] sm:$0xff]  ;;  %v241_v56 = vld [vmem:[#allocation6 + $0x528] sm:$0xff] }
  0x83   :  { %571 = vmatprep.subr.mxu1 %v273_v57  ;;  %501 = vmatpush1.msra.mxu0 %v208_v58  ;;  %v305_v57 = vld [vmem:[#allocation6 + $0x728] sm:$0xff]  ;;  %v240_v58 = vld [vmem:[#allocation6 + $0x520] sm:$0xff] }
  0x84   :  { %572 = vmatpush1.msra.mxu1 %v272_v59  ;;  %502 = vmatprep.subr.mxu0 %v207_v60  ;;  %v304_v59 = vld [vmem:[#allocation6 + $0x720] sm:$0xff]  ;;  %v239_v60 = vld [vmem:[#allocation6 + $0x518] sm:$0xff] }
  0x85   :  { %573 = vmatprep.subr.mxu1 %v271_v61  ;;  %503 = vmatpush1.msra.mxu0 %v206_v62  ;;  %v303_v61 = vld [vmem:[#allocation6 + $0x718] sm:$0xff]  ;;  %v238_v62 = vld [vmem:[#allocation6 + $0x510] sm:$0xff] }
  0x86   :  { %574 = vmatpush1.msra.mxu1 %v270_v63  ;;  %504 = vmatprep.subr.mxu0 %v205_v0  ;;  %v302_v63 = vld [vmem:[#allocation6 + $0x710] sm:$0xff]  ;;  %v237_v0 = vld [vmem:[#allocation6 + $0x508] sm:$0xff] }
  0x87   :  { %575 = vmatprep.subr.mxu1 %v269_v1  ;;  %505 = vmatpush1.msra.mxu0 %v204_v2  ;;  %v301_v1 = vld [vmem:[#allocation6 + $0x708] sm:$0xff]  ;;  %v236_v2 = vld [vmem:[#allocation6 + $0x500] sm:$0xff] }
  0x88   :  { %576 = vmatpush1.msra.mxu1 %v268_v3  ;;  %506 = vmatprep.subr.mxu0 %v267_v4  ;;  %v73_v3 = vld [vmem:[#allocation3 + $0x28] sm:$0xff]  ;;  %v300_v4 = vld [vmem:[#allocation6 + $0x700] sm:$0xff] }
  0x89   :  { %577 = vmatprep.subr.mxu1 %v331_v5  ;;  %507 = vmatpush2.msra.mxu0 %v266_v6  ;;  %v75_v5 = vld [vmem:[#allocation3 + $0x38] sm:$0xff]  ;;  %v72_v6 = vld [vmem:[#allocation3 + $0x20] sm:$0xff] }
  0x8a   :  { %578 = vmatpush2.msra.mxu1 %v330_v7  ;;  %508 = vmatprep.subr.mxu0 %v265_v8  ;;  %v74_v7 = vld [vmem:[#allocation3 + $0x30] sm:$0xff]  ;;  %v676_v8 = vld [vmem:[#allocation8 + $0xf8] sm:$0xff] }
  0x8b   :  { %579 = vmatprep.subr.mxu1 %v329_v9  ;;  %509 = vmatpush2.msra.mxu0 %v264_v10  ;;  %v675_v9 = vld [vmem:[#allocation8 + $0xf0] sm:$0xff]  ;;  %v674_v10 = vld [vmem:[#allocation8 + $0xe8] sm:$0xff] }
  0x8c   :  { %580 = vmatpush2.msra.mxu1 %v328_v11  ;;  %510 = vmatprep.subr.mxu0 %v263_v12  ;;  %v673_v11 = vld [vmem:[#allocation8 + $0xe0] sm:$0xff]  ;;  %v672_v12 = vld [vmem:[#allocation8 + $0xd8] sm:$0xff] }
  0x8d   :  { %581 = vmatprep.subr.mxu1 %v327_v13  ;;  %511 = vmatpush2.msra.mxu0 %v262_v14  ;;  %v671_v13 = vld [vmem:[#allocation8 + $0xd0] sm:$0xff]  ;;  %v670_v14 = vld [vmem:[#allocation8 + $0xc8] sm:$0xff] }
  0x8e   :  { %582 = vmatpush2.msra.mxu1 %v326_v15  ;;  %512 = vmatprep.subr.mxu0 %v261_v16  ;;  %v669_v15 = vld [vmem:[#allocation8 + $0xc0] sm:$0xff]  ;;  %v668_v16 = vld [vmem:[#allocation8 + $0xb8] sm:$0xff] }
  0x8f   :  { %583 = vmatprep.subr.mxu1 %v325_v17  ;;  %513 = vmatpush2.msra.mxu0 %v260_v18  ;;  %v667_v17 = vld [vmem:[#allocation8 + $0xb0] sm:$0xff]  ;;  %v666_v18 = vld [vmem:[#allocation8 + $0xa8] sm:$0xff] }
  0x90   :  { %584 = vmatpush2.msra.mxu1 %v324_v19  ;;  %514 = vmatprep.subr.mxu0 %v259_v20  ;;  %v665_v19 = vld [vmem:[#allocation8 + $0xa0] sm:$0xff]  ;;  %v664_v20 = vld [vmem:[#allocation8 + $0x98] sm:$0xff] }
  0x91   :  { %585 = vmatprep.subr.mxu1 %v323_v21  ;;  %515 = vmatpush2.msra.mxu0 %v258_v22  ;;  %v663_v21 = vld [vmem:[#allocation8 + $0x90] sm:$0xff]  ;;  %v662_v22 = vld [vmem:[#allocation8 + $0x88] sm:$0xff] }
  0x92   :  { %586 = vmatpush2.msra.mxu1 %v322_v23  ;;  %516 = vmatprep.subr.mxu0 %v257_v24  ;;  %v661_v23 = vld [vmem:[#allocation8 + $0x80] sm:$0xff]  ;;  %v660_v24 = vld [vmem:[#allocation8 + $0x78] sm:$0xff] }
  0x93   :  { %587 = vmatprep.subr.mxu1 %v321_v25  ;;  %517 = vmatpush2.msra.mxu0 %v256_v26  ;;  %v659_v25 = vld [vmem:[#allocation8 + $0x70] sm:$0xff]  ;;  %v658_v26 = vld [vmem:[#allocation8 + $0x68] sm:$0xff] }
  0x94   :  { %588 = vmatpush2.msra.mxu1 %v320_v27  ;;  %518 = vmatprep.subr.mxu0 %v255_v28  ;;  %v657_v27 = vld [vmem:[#allocation8 + $0x60] sm:$0xff]  ;;  %v656_v28 = vld [vmem:[#allocation8 + $0x58] sm:$0xff] }
  0x95   :  { %589 = vmatprep.subr.mxu1 %v319_v29  ;;  %519 = vmatpush2.msra.mxu0 %v254_v30  ;;  %v655_v29 = vld [vmem:[#allocation8 + $0x50] sm:$0xff]  ;;  %v654_v30 = vld [vmem:[#allocation8 + $0x48] sm:$0xff] }
  0x96   :  { %590 = vmatpush2.msra.mxu1 %v318_v31  ;;  %520 = vmatprep.subr.mxu0 %v253_v32  ;;  %v653_v31 = vld [vmem:[#allocation8 + $0x40] sm:$0xff]  ;;  %v652_v32 = vld [vmem:[#allocation8 + $0x38] sm:$0xff] }
  0x97   :  { %591 = vmatprep.subr.mxu1 %v317_v33  ;;  %521 = vmatpush2.msra.mxu0 %v252_v34  ;;  %v651_v33 = vld [vmem:[#allocation8 + $0x30] sm:$0xff]  ;;  %v650_v34 = vld [vmem:[#allocation8 + $0x28] sm:$0xff] }
  0x98   :  { %592 = vmatpush2.msra.mxu1 %v316_v35  ;;  %522 = vmatprep.subr.mxu0 %v251_v36  ;;  %v649_v35 = vld [vmem:[#allocation8 + $0x20] sm:$0xff]  ;;  %v648_v36 = vld [vmem:[#allocation8 + $0x18] sm:$0xff] }
  0x99   :  { %593 = vmatprep.subr.mxu1 %v315_v37  ;;  %523 = vmatpush2.msra.mxu0 %v250_v38  ;;  %v647_v37 = vld [vmem:[#allocation8 + $0x10] sm:$0xff]  ;;  %v646_v38 = vld [vmem:[#allocation8 + $0x8] sm:$0xff] }
  0x9a   :  { %594 = vmatpush2.msra.mxu1 %v314_v39  ;;  %524 = vmatprep.subr.mxu0 %v249_v40  ;;  %v645_v39 = vld [vmem:[#allocation8] sm:$0xff]  ;;  %v708_v40 = vld [vmem:[#allocation8 + $0x1f8] sm:$0xff] }
  0x9b   :  { %595 = vmatprep.subr.mxu1 %v313_v41  ;;  %525 = vmatpush2.msra.mxu0 %v248_v42  ;;  %v707_v41 = vld [vmem:[#allocation8 + $0x1f0] sm:$0xff]  ;;  %v706_v42 = vld [vmem:[#allocation8 + $0x1e8] sm:$0xff] }
  0x9c   :  { %596 = vmatpush2.msra.mxu1 %v312_v43  ;;  %526 = vmatprep.subr.mxu0 %v247_v44  ;;  %v705_v43 = vld [vmem:[#allocation8 + $0x1e0] sm:$0xff]  ;;  %v704_v44 = vld [vmem:[#allocation8 + $0x1d8] sm:$0xff] }
  0x9d   :  { %597 = vmatprep.subr.mxu1 %v311_v45  ;;  %527 = vmatpush2.msra.mxu0 %v246_v46  ;;  %v703_v45 = vld [vmem:[#allocation8 + $0x1d0] sm:$0xff]  ;;  %v702_v46 = vld [vmem:[#allocation8 + $0x1c8] sm:$0xff] }
  0x9e   :  { %598 = vmatpush2.msra.mxu1 %v310_v47  ;;  %528 = vmatprep.subr.mxu0 %v245_v48  ;;  %v701_v47 = vld [vmem:[#allocation8 + $0x1c0] sm:$0xff]  ;;  %v700_v48 = vld [vmem:[#allocation8 + $0x1b8] sm:$0xff] }
  0x9f   :  { %599 = vmatprep.subr.mxu1 %v309_v49  ;;  %529 = vmatpush2.msra.mxu0 %v244_v50  ;;  %v699_v49 = vld [vmem:[#allocation8 + $0x1b0] sm:$0xff]  ;;  %v698_v50 = vld [vmem:[#allocation8 + $0x1a8] sm:$0xff] }
  0xa0   :  { %600 = vmatpush2.msra.mxu1 %v308_v51  ;;  %530 = vmatprep.subr.mxu0 %v243_v52  ;;  %v697_v51 = vld [vmem:[#allocation8 + $0x1a0] sm:$0xff]  ;;  %v696_v52 = vld [vmem:[#allocation8 + $0x198] sm:$0xff] }
  0xa1   :  { %601 = vmatprep.subr.mxu1 %v307_v53  ;;  %531 = vmatpush2.msra.mxu0 %v242_v54  ;;  %v695_v53 = vld [vmem:[#allocation8 + $0x190] sm:$0xff]  ;;  %v694_v54 = vld [vmem:[#allocation8 + $0x188] sm:$0xff] }
  0xa2   :  { %602 = vmatpush2.msra.mxu1 %v306_v55  ;;  %532 = vmatprep.subr.mxu0 %v241_v56  ;;  %v693_v55 = vld [vmem:[#allocation8 + $0x180] sm:$0xff]  ;;  %v692_v56 = vld [vmem:[#allocation8 + $0x178] sm:$0xff] }
  0xa3   :  { %603 = vmatprep.subr.mxu1 %v305_v57  ;;  %533 = vmatpush2.msra.mxu0 %v240_v58  ;;  %v691_v57 = vld [vmem:[#allocation8 + $0x170] sm:$0xff]  ;;  %v690_v58 = vld [vmem:[#allocation8 + $0x168] sm:$0xff] }
  0xa4   :  { %604 = vmatpush2.msra.mxu1 %v304_v59  ;;  %534 = vmatprep.subr.mxu0 %v239_v60  ;;  %v689_v59 = vld [vmem:[#allocation8 + $0x160] sm:$0xff]  ;;  %v688_v60 = vld [vmem:[#allocation8 + $0x158] sm:$0xff] }
  0xa5   :  { %605 = vmatprep.subr.mxu1 %v303_v61  ;;  %535 = vmatpush2.msra.mxu0 %v238_v62  ;;  %v687_v61 = vld [vmem:[#allocation8 + $0x150] sm:$0xff]  ;;  %v686_v62 = vld [vmem:[#allocation8 + $0x148] sm:$0xff] }
  0xa6   :  { %606 = vmatpush2.msra.mxu1 %v302_v63  ;;  %536 = vmatprep.subr.mxu0 %v237_v0  ;;  %v685_v63 = vld [vmem:[#allocation8 + $0x140] sm:$0xff]  ;;  %v684_v0 = vld [vmem:[#allocation8 + $0x138] sm:$0xff] }
  0xa7   :  { %607 = vmatprep.subr.mxu1 %v301_v1  ;;  %537 = vmatpush2.msra.mxu0 %v236_v2  ;;  %v683_v1 = vld [vmem:[#allocation8 + $0x130] sm:$0xff]  ;;  %v682_v2 = vld [vmem:[#allocation8 + $0x128] sm:$0xff] }
  0xa8   :  { %538 = vmatprep.mubr.f32.mxu0 %v73_v3  ;;  %608 = vmatpush2.msra.mxu1 %v300_v4  ;;  %v681_v3 = vld [vmem:[#allocation8 + $0x120] sm:$0xff]  ;;  %v680_v4 = vld [vmem:[#allocation8 + $0x118] sm:$0xff] }
  0xa9   :  { %609 = vmatprep.mubr.f32.mxu1 %v75_v5  ;;  %539 = vmatmul.mubr.f32.vlgmr.msra.gmra.mxu0 %v72_v6  ;;  %v679_v5 = vld [vmem:[#allocation8 + $0x110] sm:$0xff]  ;;  %v678_v6 = vld [vmem:[#allocation8 + $0x108] sm:$0xff] }
  0xaa   :  { %610 = vmatmul.mubr.f32.vlgmr.msra.gmra.mxu1 %v74_v7  ;;  %721 = vmatprep.subr.mxu0 %v676_v8  ;;  %v677_v7 = vld [vmem:[#allocation8 + $0x100] sm:$0xff]  ;;  %v627_v8 = vlaneseq }
  0xab   :  { %722 = vmatpush1.msra.mxu0 %v675_v9 }
  0xac   :  { %723 = vmatprep.subr.mxu0 %v674_v10 }
  0xad   :  { %724 = vmatpush1.msra.mxu0 %v673_v11  ;;  %v628_v11 = vshrl.u32 %v627_v8, 7 }
  0xae   :  { %725 = vmatprep.subr.mxu0 %v672_v12 }
  0xaf   :  { %726 = vmatpush1.msra.mxu0 %v671_v13 }
  0xb0   :  { %727 = vmatprep.subr.mxu0 %v670_v14  ;;  %v629_v14 = vsub.s32 0, %v628_v11 }
  0xb1   :  { %728 = vmatpush1.msra.mxu0 %v669_v15 }
  0xb2   :  { %729 = vmatprep.subr.mxu0 %v668_v16  ;;  %v625_v16 = vld [vmem:[%s960_s2] sm:$0x3] }
  0xb3   :  { %730 = vmatpush1.msra.mxu0 %v667_v17  ;;  %v633_v17 = vsub.s32 1, %v628_v11 }
  0xb4   :  { %731 = vmatprep.subr.mxu0 %v666_v18 }
  0xb5   :  { %732 = vmatpush1.msra.mxu0 %v665_v19 }
  0xb6   :  { %733 = vmatprep.subr.mxu0 %v664_v20 }
  0xb7   :  { %734 = vmatpush1.msra.mxu0 %v663_v21 }
  0xb8   :  { %735 = vmatprep.subr.mxu0 %v662_v22  ;;  %v630_v22 = vrot.slane %v625_v16, %v629_v14 }
  0xb9   :  { %736 = vmatpush1.msra.mxu0 %v661_v23 }
  0xba   :  { %737 = vmatprep.subr.mxu0 %v660_v24 }
  0xbb   :  { %738 = vmatpush1.msra.mxu0 %v659_v25 }
  0xbc   :  { %739 = vmatprep.subr.mxu0 %v658_v26  ;;  %v634_v26 = vrot.slane %v625_v16, %v633_v17 }
  0xbd   :  { %740 = vmatpush1.msra.mxu0 %v657_v27 }
  0xbe   :  { %741 = vmatprep.subr.mxu0 %v656_v28 }
  0xbf   :  { %742 = vmatpush1.msra.mxu0 %v655_v29 }
  0xc0   :  { %743 = vmatprep.subr.mxu0 %v654_v30 }
  0xc1   :  { %744 = vmatpush1.msra.mxu0 %v653_v31 }
  0xc2   :  { %745 = vmatprep.subr.mxu0 %v652_v32 }
  0xc3   :  { %746 = vmatpush1.msra.mxu0 %v651_v33  ;;  %v709_v33 = vld [vmem:[%s962_s4] sm:$0x3] }
  0xc4   :  { %747 = vmatprep.subr.mxu0 %v650_v34  ;;  %v714_v34 = vrot.slane %v709_v33, %v629_v14 }
  0xc5   :  { %748 = vmatpush1.msra.mxu0 %v649_v35  ;;  %v718_v35 = vrot.slane %v709_v33, %v633_v17 }
  0xc6   :  { %749 = vmatprep.subr.mxu0 %v648_v36 }
  0xc7   :  { %750 = vmatpush1.msra.mxu0 %v647_v37 }
  0xc8   :  { %751 = vmatprep.subr.mxu0 %v646_v38 }
  0xc9   :  { %752 = vmatpush1.msra.mxu0 %v645_v39 }
  0xca   :  { %753 = vmatprep.subr.mxu0 %v708_v40 }
  0xcb   :  { %754 = vmatpush2.msra.mxu0 %v707_v41 }
  0xcc   :  { %755 = vmatprep.subr.mxu0 %v706_v42 }
  0xcd   :  { %756 = vmatpush2.msra.mxu0 %v705_v43 }
  0xce   :  { %757 = vmatprep.subr.mxu0 %v704_v44 }
  0xcf   :  { %758 = vmatpush2.msra.mxu0 %v703_v45 }
  0xd0   :  { %759 = vmatprep.subr.mxu0 %v702_v46 }
  0xd1   :  { %760 = vmatpush2.msra.mxu0 %v701_v47 }
  0xd2   :  { %761 = vmatprep.subr.mxu0 %v700_v48 }
  0xd3   :  { %762 = vmatpush2.msra.mxu0 %v699_v49 }
  0xd4   :  { %763 = vmatprep.subr.mxu0 %v698_v50 }
  0xd5   :  { %764 = vmatpush2.msra.mxu0 %v697_v51 }
  0xd6   :  { %765 = vmatprep.subr.mxu0 %v696_v52 }
  0xd7   :  { %766 = vmatpush2.msra.mxu0 %v695_v53 }
  0xd8   :  { %767 = vmatprep.subr.mxu0 %v694_v54 }
  0xd9   :  { %768 = vmatpush2.msra.mxu0 %v693_v55 }
  0xda   :  { %769 = vmatprep.subr.mxu0 %v692_v56 }
  0xdb   :  { %770 = vmatpush2.msra.mxu0 %v691_v57 }
  0xdc   :  { %771 = vmatprep.subr.mxu0 %v690_v58 }
  0xdd   :  { %772 = vmatpush2.msra.mxu0 %v689_v59 }
  0xde   :  { %773 = vmatprep.subr.mxu0 %v688_v60 }
  0xdf   :  { %774 = vmatpush2.msra.mxu0 %v687_v61 }
  0xe0   :  { %775 = vmatprep.subr.mxu0 %v686_v62 }
  0xe1   :  { %776 = vmatpush2.msra.mxu0 %v685_v63 }
  0xe2   :  { %777 = vmatprep.subr.mxu0 %v684_v0 }
  0xe3   :  { %778 = vmatpush2.msra.mxu0 %v683_v1 }
  0xe4   :  { %779 = vmatprep.subr.mxu0 %v682_v2 }
  0xe5   :  { %780 = vmatpush2.msra.mxu0 %v681_v3 }
  0xe6   :  { %781 = vmatprep.subr.mxu0 %v680_v4 }
  0xe7   :  { %782 = vmatpush2.msra.mxu0 %v679_v5 }
  0xe8   :  { %783 = vmatprep.subr.mxu0 %v678_v6 }
  0xe9   :  { %784 = vmatpush2.msra.mxu0 %v677_v7 }
 0x127   :  { %v398_v9 = vpop.f32.mrf.mxu0 }
 0x128   :  { %v469_v10 = vpop.f32.mrf.mxu1 }
 0x129   :  { %v400_v12 = vpop.f32.mrf.mxu0  ;;  %v470_v15 = vadd.f32 %v469_v10, %v398_v9 }
 0x12a   :  { %v471_v13 = vpop.f32.mrf.mxu1 }
 0x12b   :  { %v472_v20 = vadd.f32 %v471_v13, %v400_v12 }
 0x169   :  { %v540_v18 = vpop.f32.mrf.mxu0 }
 0x16a   :  { %v611_v19 = vpop.f32.mrf.mxu1  ;;  %v541_v21 = vadd.f32 %v540_v18, %v470_v15 }
 0x16b   :  { %v542_v23 = vpop.f32.mrf.mxu0 }
 0x16c   :  { %v612_v24 = vadd.f32 %v611_v19, %v541_v21  ;;  %v543_v25 = vadd.f32 %v542_v23, %v472_v20  ;;  %v613_v27 = vpop.f32.mrf.mxu1 }
 0x16e   :  { %v614_v28 = vadd.f32 %v613_v27, %v543_v25  ;;  %v637_v29 = vadd.f32 %v630_v22, %v612_v24 }
 0x170   :  { %v638_v30 = vadd.f32 %v634_v26, %v614_v28  ;;  %v639_v32 = vmax.f32 %v637_v29, 0.0 }
 0x172   :  { %v640_v31 = vmax.f32 %v638_v30, 0.0 }
 0x174   :  { %785 = vmatprep.mubr.f32.mxu0 %v640_v31 }
 0x175   :  { %786 = vmatmul.mubr.f32.vlgmr.msra.gmra.mxu0 %v639_v32 }
 0x235   :  { %v787_v36 = vpop.f32.mrf.mxu0 }
 0x236   :  { %v788_v37 = vadd.f32 %v787_v36, %v714_v34 }
 0x237   :  { %v789_v38 = vpop.f32.mrf.mxu0 }
 0x238   :  { %v792_v39 = vmax.f32 %v788_v37, 0.0  ;;  %v790_v40 = vadd.f32 %v789_v38, %v718_v35 }
 0x23a   :  { %794 = vst [vmem:[#allocation9] sm:$0xff] %v792_v39  ;;  %v793_v41 = vmax.f32 %v790_v40, 0.0 }
 0x23c   :  { %795 = vst [vmem:[#allocation9 + $0x8] sm:$0xff] %v793_v41 }
 0x23d   :  { %889 = shalt.err (!%p886_p5)
}
 0x23e   :  { %805 = dma.vmem_to_hbm [thread:$0]  %s803_s11, 256, %s963_s5, [#allocation5]  }
 0x23f   :  { %902 = dma.done.wait [#allocation5], 256  }
 0x240   :  { %903 = vsyncadd [#allocation5], 4294967040 }
 0x241   :  { %809 = vsyncpa [#allocation4], 1 }
 0x242   :  { %810 = vsyncpa [#allocation7], 1 }
 0x243   :  { %811 = vsyncpa [#allocation5], 1 }

</bundles_post_ra>
